<compile_context>
chip_gen: v6e
topology: v6e:2x2x1
jax: 0.10.0
libtpu: 0.0.40
codegen_flags: <defaults>
</compile_context>

<pallas_src>
import functools

import jax
import jax.numpy as jnp
from jax.experimental import pallas as pl
from jax.experimental.pallas import tpu as pltpu


def _round_up(x, m):
    return (x + m - 1) // m * m


def _poly_step_kernel(theta_ref, adj_ref, feat_ref, h_ref,
                      feat_out_ref, h_out_ref, acc_ref, *, tm, tk):
    """One polynomial step, tiled over (dst rows i, contraction k):
         agg      = adj_norm @ feat
         feat_new = feat - agg
         h_new    = h + theta_k * feat_new
    Outputs are written once, on the last contraction tile (accumulator pattern).
    """
    i = pl.program_id(0)
    k = pl.program_id(1)

    @pl.when(k == 0)
    def _():
        acc_ref[...] = jnp.zeros_like(acc_ref)

    # Lane-dense (tk, Fp) slice of the resident f32 feature matrix; cast to bf16
    # so both MXU operands are bf16 (f32 accumulation via preferred_element_type).
    src = pl.multiple_of(k * tk, tk)
    rhs = feat_ref[pl.ds(src, tk), :].astype(jnp.bfloat16)
    acc_ref[...] += jnp.dot(adj_ref[...], rhs,
                            preferred_element_type=jnp.float32)

    @pl.when(k == pl.num_programs(1) - 1)
    def _():
        dst = pl.multiple_of(i * tm, tm)
        new_feat = feat_ref[pl.ds(dst, tm), :] - acc_ref[...]
        feat_out_ref[...] = new_feat.astype(feat_out_ref.dtype)
        h_out_ref[...] = (h_ref[...] + theta_ref[0] * new_feat).astype(h_out_ref.dtype)


def _vmem_budget(np_, fp, tm, tk):
    """Conservative VMEM budget for one step (double-buffered inputs/outputs)."""
    need = (
        2 * tm * tk * 2          # bf16 adj tiles, double buffered
        + 2 * np_ * fp * 4       # resident f32 feat (generous: x2)
        + 2 * tm * fp * 4        # h row tiles
        + 2 * 2 * tm * fp * 4    # two f32 output row tiles, double buffered
        + tm * fp * 4            # accumulator scratch
    )
    # 4 MiB headroom; cap at 64 MiB so the same setting is safe on v7x.
    return int(min(need + (4 << 20), 64 << 20))


def _poly_step(adj_norm_bf16, feat, h, theta_k, *, tm, tk):
    Np, Fp = feat.shape
    grid = (Np // tm, Np // tk)
    kernel = functools.partial(_poly_step_kernel, tm=tm, tk=tk)
    theta_arr = jnp.asarray([theta_k], dtype=jnp.float32)

    feat_new, h_new = pl.pallas_call(
        kernel,
        out_shape=(jax.ShapeDtypeStruct((Np, Fp), jnp.float32),
                   jax.ShapeDtypeStruct((Np, Fp), jnp.float32)),
        grid_spec=pltpu.PrefetchScalarGridSpec(
            num_scalar_prefetch=1,
            grid=grid,
            in_specs=[
                pl.BlockSpec((tm, tk), lambda i, k, th: (i, k)),   # adj_norm tile (bf16)
                pl.BlockSpec((Np, Fp), lambda i, k, th: (0, 0)),   # feat, fully resident (f32)
                pl.BlockSpec((tm, Fp), lambda i, k, th: (i, 0)),   # h row tile (f32)
            ],
            out_specs=[
                pl.BlockSpec((tm, Fp), lambda i, k, th: (i, 0)),   # feat_new rows
                pl.BlockSpec((tm, Fp), lambda i, k, th: (i, 0)),   # h_new rows
            ],
            scratch_shapes=[pltpu.VMEM((tm, Fp), jnp.float32)],
        ),
        compiler_params=pltpu.CompilerParams(
            dimension_semantics=("parallel", "arbitrary"),
            vmem_limit_bytes=_vmem_budget(Np, Fp, tm, tk),
        ),
    )(theta_arr, adj_norm_bf16, feat, h)
    return feat_new, h_new


def poly_conv(adj, feat, theta, *, tm=128, tk=128):
    """PolyConv forward (lin=False) on a dense adjacency.

    adj : (N, N) f32, adj[d, s] = 1.0 iff edge s -> d (aggregation == adj @ feat)
    feat: (N, F) f32
    theta: K polynomial coefficients
    """
    N, F = feat.shape
    theta = [float(t) for t in theta]

    # One-time normalization folded into the adjacency (wrapper-side, O(N^2)):
    # in_degrees = row sums of adj, clamped at 1 like the PyTorch module.
    in_deg = jnp.sum(adj, axis=1)
    d_invsqrt = jax.lax.rsqrt(jnp.maximum(in_deg, 1.0))
    adj_norm = d_invsqrt[:, None] * adj * d_invsqrt[None, :]

    # Pad node and feature dims to MXU/lane-friendly multiples of 128.
    Np = _round_up(N, max(tm, tk))
    Fp = _round_up(F, 128)
    adj_p = jnp.zeros((Np, Np), jnp.float32).at[:N, :N].set(adj_norm)
    adj_p = adj_p.astype(jnp.bfloat16)                       # MXU-native dtype
    feat_p = jnp.zeros((Np, Fp), jnp.float32).at[:N, :F].set(feat)

    h = theta[0] * feat_p
    for k in range(1, len(theta)):                           # K is small (3); cross-step dep
        feat_p, h = _poly_step(adj_p, feat_p, h, theta[k], tm=tm, tk=tk)
    return h[:N, :F]


def poly_conv_ref(adj, feat, theta):
    """Pure-JAX f32 reference mirroring the PyTorch forward."""
    in_deg = jnp.sum(adj, axis=1)
    d_invsqrt = jnp.power(jnp.maximum(in_deg, 1.0), -0.5)[:, None]
    h = theta[0] * feat
    for k in range(1, len(theta)):
        feat = feat - (adj @ (feat * d_invsqrt)) * d_invsqrt
        h = h + theta[k] * feat
    return h


if __name__ == "__main__":
    key = jax.random.PRNGKey(0)
    k_adj, k_feat = jax.random.split(key)

    N = 256                       # number of graph nodes
    F = 32                        # in_feats == out_feats (lin=False: no linear layer)
    theta = (1.0, 0.5, 0.25)      # deterministic polynomial coefficients, K = 3

    # Synthetic symmetric adjacency (undirected graph), no self loops.
    rand = jax.random.uniform(k_adj, (N, N))
    adj = (rand + rand.T > 1.4).astype(jnp.float32)
    adj = adj * (1.0 - jnp.eye(N, dtype=jnp.float32))

    feat = jax.random.normal(k_feat, (N, F), dtype=jnp.float32)

    out = poly_conv(adj, feat, theta)
    out = jax.block_until_ready(out)

    ref = poly_conv_ref(adj, feat, theta)
    # bf16 MXU operands (normalized adjacency + feat slices) vs f32 reference:
    # expected error ~1e-3; compare with a bf16-scale tolerance.
    assert out.shape == ref.shape
    max_err = float(jnp.max(jnp.abs(out - ref)))
    assert jnp.allclose(out, ref, atol=2e-2, rtol=2e-2), (
        f"mismatch vs reference: max abs err {max_err:.3e}")

    print("KERNEL_OK")
</pallas_src>

<mosaic_0001>
module attributes {stable_mosaic.version = 11 : i64} {
  func.func @_poly_step_kernel(%arg0: i32, %arg1: i32, %arg2: memref<1xf32, #tpu.memory_space<smem>>, %arg3: memref<128x128xbf16, #tpu.memory_space<vmem>>, %arg4: memref<256x128xf32, #tpu.memory_space<vmem>>, %arg5: memref<128x128xf32, #tpu.memory_space<vmem>>, %arg6: memref<128x128xf32, #tpu.memory_space<vmem>>, %arg7: memref<128x128xf32, #tpu.memory_space<vmem>>, %arg8: memref<128x128xf32, #tpu.memory_space<vmem>>) attributes {dimension_semantics = [#tpu.dimension_semantics<parallel>, #tpu.dimension_semantics<arbitrary>], iteration_bounds = array<i64: 2, 2>, scalar_prefetch = 1 : i64, scratch_operands = 1 : i64, tpu.core_type = #tpu.core_type<tc>, window_params = [{transform_indices = @transform_0, window_bounds = array<i64: 128, 128>}, {pipeline_mode = #tpu.pipeline_mode<synchronous>, transform_indices = @transform_1, window_bounds = array<i64: 256, 128>}, {transform_indices = @transform_2, window_bounds = array<i64: 128, 128>}, {transform_indices = @transform_3, window_bounds = array<i64: 128, 128>}, {transform_indices = @transform_4, window_bounds = array<i64: 128, 128>}]} {
    %c0_i32 = arith.constant 0 : i32
    %0 = arith.cmpi eq, %arg1, %c0_i32 : i32
    %1 = arith.extui %0 : i1 to i32
    %c0_i32_0 = arith.constant 0 : i32
    %2 = arith.cmpi ne, %1, %c0_i32_0 : i32
    scf.if %2 {
      %cst_8 = arith.constant 0.000000e+00 : f32
      %16 = vector.broadcast %cst_8 : f32 to vector<128x128xf32>
      %c0_9 = arith.constant 0 : index
      %c0_10 = arith.constant 0 : index
      %17 = vector.load %arg8[%c0_9, %c0_10] : memref<128x128xf32, #tpu.memory_space<vmem>>, vector<128x128xf32>
      tpu.vector_store %arg8[%c0_9, %c0_10], %16 {strides = array<i32>} : memref<128x128xf32, #tpu.memory_space<vmem>>, vector<128x128xf32>,
    } else {
    }
    %c128_i32 = arith.constant 128 : i32
    %3 = arith.muli %arg1, %c128_i32 : i32
    %4 = tpu.assume_multiple %3, 128 : i32
    %5 = arith.index_cast %4 : i32 to index
    %c0 = arith.constant 0 : index
    %6 = vector.load %arg4[%5, %c0] : memref<256x128xf32, #tpu.memory_space<vmem>>, vector<128x128xf32>
    %7 = arith.truncf %6 : vector<128x128xf32> to vector<128x128xbf16>
    %c0_1 = arith.constant 0 : index
    %c0_2 = arith.constant 0 : index
    %8 = vector.load %arg8[%c0_1, %c0_2] : memref<128x128xf32, #tpu.memory_space<vmem>>, vector<128x128xf32>
    %c0_3 = arith.constant 0 : index
    %c0_4 = arith.constant 0 : index
    %9 = vector.load %arg3[%c0_3, %c0_4] : memref<128x128xbf16, #tpu.memory_space<vmem>>, vector<128x128xbf16>
    %cst = arith.constant dense<0.000000e+00> : vector<128x128xf32>
    %10 = tpu.matmul %9, %7, %cst {dimension_numbers = #tpu.dot_dimension_numbers<[1], [0], [0], [1], [0, 0, 1, 1], [], []>} : vector<128x128xbf16>, vector<128x128xbf16>, vector<128x128xf32> -> vector<128x128xf32>
    %11 = arith.addf %8, %10 : vector<128x128xf32>
    %c0_5 = arith.constant 0 : index
    %c0_6 = arith.constant 0 : index
    %12 = vector.load %arg8[%c0_5, %c0_6] : memref<128x128xf32, #tpu.memory_space<vmem>>, vector<128x128xf32>
    tpu.vector_store %arg8[%c0_5, %c0_6], %11 {strides = array<i32>} : memref<128x128xf32, #tpu.memory_space<vmem>>, vector<128x128xf32>,
    %c1_i32 = arith.constant 1 : i32
    %13 = arith.cmpi eq, %arg1, %c1_i32 : i32
    %14 = arith.extui %13 : i1 to i32
    %c0_i32_7 = arith.constant 0 : i32
    %15 = arith.cmpi ne, %14, %c0_i32_7 : i32
    scf.if %15 {
      %c128_i32_8 = arith.constant 128 : i32
      %16 = arith.muli %arg0, %c128_i32_8 : i32
      %17 = tpu.assume_multiple %16, 128 : i32
      %18 = arith.index_cast %17 : i32 to index
      %c0_9 = arith.constant 0 : index
      %19 = vector.load %arg4[%18, %c0_9] : memref<256x128xf32, #tpu.memory_space<vmem>>, vector<128x128xf32>
      %c0_10 = arith.constant 0 : index
      %c0_11 = arith.constant 0 : index
      %20 = vector.load %arg8[%c0_10, %c0_11] : memref<128x128xf32, #tpu.memory_space<vmem>>, vector<128x128xf32>
      %21 = arith.subf %19, %20 : vector<128x128xf32>
      %c0_12 = arith.constant 0 : index
      %c0_13 = arith.constant 0 : index
      %22 = vector.load %arg6[%c0_12, %c0_13] : memref<128x128xf32, #tpu.memory_space<vmem>>, vector<128x128xf32>
      tpu.vector_store %arg6[%c0_12, %c0_13], %21 {strides = array<i32>} : memref<128x128xf32, #tpu.memory_space<vmem>>, vector<128x128xf32>,
      %c0_14 = arith.constant 0 : index
      %c0_15 = arith.constant 0 : index
      %23 = vector.load %arg5[%c0_14, %c0_15] : memref<128x128xf32, #tpu.memory_space<vmem>>, vector<128x128xf32>
      %c0_16 = arith.constant 0 : index
      %24 = memref.load %arg2[%c0_16] : memref<1xf32, #tpu.memory_space<smem>>
      %25 = vector.broadcast %24 : f32 to vector<128x128xf32>
      %26 = arith.mulf %25, %21 : vector<128x128xf32>
      %27 = arith.addf %23, %26 : vector<128x128xf32>
      %c0_17 = arith.constant 0 : index
      %c0_18 = arith.constant 0 : index
      %28 = vector.load %arg7[%c0_17, %c0_18] : memref<128x128xf32, #tpu.memory_space<vmem>>, vector<128x128xf32>
      tpu.vector_store %arg7[%c0_17, %c0_18], %27 {strides = array<i32>} : memref<128x128xf32, #tpu.memory_space<vmem>>, vector<128x128xf32>,
    } else {
    }
    return
  }
  func.func @transform_0(%arg0: i32, %arg1: i32, %arg2: memref<1xf32, #tpu.memory_space<smem>>) -> (i32, i32) {
    %c0_i32 = arith.constant 0 : i32
    return %arg0, %arg1 : i32, i32
  }
  func.func @transform_1(%arg0: i32, %arg1: i32, %arg2: memref<1xf32, #tpu.memory_space<smem>>) -> (i32, i32) {
    %c0_i32 = arith.constant 0 : i32
    %c0_i32_0 = arith.constant 0 : i32
    %c0_i32_1 = arith.constant 0 : i32
    return %c0_i32, %c0_i32_0 : i32, i32
  }
  func.func @transform_2(%arg0: i32, %arg1: i32, %arg2: memref<1xf32, #tpu.memory_space<smem>>) -> (i32, i32) {
    %c0_i32 = arith.constant 0 : i32
    %c0_i32_0 = arith.constant 0 : i32
    return %arg0, %c0_i32 : i32, i32
  }
  func.func @transform_3(%arg0: i32, %arg1: i32, %arg2: memref<1xf32, #tpu.memory_space<smem>>) -> (i32, i32) {
    %c0_i32 = arith.constant 0 : i32
    %c0_i32_0 = arith.constant 0 : i32
    return %arg0, %c0_i32 : i32, i32
  }
  func.func @transform_4(%arg0: i32, %arg1: i32, %arg2: memref<1xf32, #tpu.memory_space<smem>>) -> (i32, i32) {
    %c0_i32 = arith.constant 0 : i32
    %c0_i32_0 = arith.constant 0 : i32
    return %arg0, %c0_i32 : i32, i32
  }
}

</mosaic_0001>

<bundles_post_ra>
// kernel: tpu_custom_call.1
= control target key start
LH: loop header
LB: loop body
LE: loop exit
PB: predicated region body
PF: predicated region fallthrough
CT: control target
= control target key end

     0   :  { %s1866_s0 = inlined_call_operand.<no memory space> [shape: f32[1], index: 0, kind: input, shape index: {}]   ;;  %s1867_s1 = inlined_call_operand.hbm [shape: bf16[256,256], index: 1, kind: input, shape index: {}]   ;;  %s1868_s2 = inlined_call_operand.hbm [shape: f32[256,128], index: 2, kind: input, shape index: {}]   ;;  %s1869_s3 = inlined_call_operand.hbm [shape: f32[256,128], index: 3, kind: input, shape index: {}]   ;;  %s1870_s4 = inlined_call_operand.hbm [shape: f32[256,128], index: 4, kind: output, shape index: {0}]   ;;  %s1871_s5 = inlined_call_operand.hbm [shape: f32[256,128], index: 5, kind: output, shape index: {1}]  }
   0x1   :  { %1883 = sst [smem:[#allocation24_spill]] %s1867_s1 }
   0x2   :  { %1884 = sst [smem:[#allocation25_spill]] %s1870_s4 }
   0x3   :  { %1885 = sst [smem:[#allocation26_spill]] %s1871_s5 }
   0x4   :  { %11 = sst [smem:[#allocation4]] %s1866_s0 }
   0x5   :  { %12 = vsyncpa [#allocation6], 0 }
   0x6   :  { %14 = vsyncpa [#allocation6 + $0x1], 0 }
   0x7   :  { %15 = vsyncpa [#allocation9], 0 }
   0x8   :  { %16 = vsyncpa [#allocation7], 0 }
   0x9   :  { %18 = vsyncpa [#allocation7 + $0x1], 0 }
   0xa   :  { %19 = vsyncpa [#allocation13], 0 }
   0xb   :  { %21 = vsyncpa [#allocation13 + $0x1], 0  ;;  %s1411_s20 = smov 0   ;;  %s1413_s21 = smov 0  }
   0xc   :  { %s1415_s22 = smov 0   ;;  %s1417_s23 = smov 0  }
   0xd   :  { %s1419_s24 = smov 0   ;;  %s1421_s25 = smov 0  }
   0xe   :  { %s1423_s0 = smov 0   ;;  %s1425_s26 = smov 0  }
   0xf   :  { %s1427_s27 = smov 0   ;;  %s1429_s28 = smov 0  }
  0x10   :  { %s1431_s29 = smov 0  }
  0x11 LB: > { %1886 = sst [smem:[#allocation19_spill]] %s1352_s26  ;;  %s36_s30 = sadd.s32 1, %s1356_s27  ;;  %s1364_s29 = sphi %s1431_s29, %s27_s29   ;;  %s1360_s28 = sphi %s1429_s28, %s1926_s28   ;;  %s1356_s27 = sphi %s1427_s27, %s1917_s27   ;;  %s1352_s26 = sphi %s1425_s26, %s1925_s26   ;;  %s1348_s0 = sphi %s1423_s0, %s1916_s0   ;;  %s1344_s25 = sphi %s1421_s25, %s1924_s25   ;;  %s1340_s24 = sphi %s1419_s24, %s1923_s24   ;;  %s1336_s23 = sphi %s1417_s23, %s1922_s23   ;;  %s1332_s22 = sphi %s1415_s22, %s1921_s22   ;;  %s1328_s21 = sphi %s1413_s21, %s1920_s21   ;;  %s1324_s20 = sphi %s1411_s20, %s1919_s20  }
  0x12   : > { %1887 = sst [smem:[#allocation20_spill]] %s1356_s27  ;;  %s39_s6 = sadd.s32 1, %s1360_s28 }
  0x13   : > { %p37_p0 = scmp.ge.s32.totalorder %s36_s30, 2  ;;  %s48_s7 = sadd.s32 1, %s1344_s25 }
  0x14   : > { %p55_p1 = scmp.ne.s32.totalorder %s1344_s25, %s1340_s24  ;;  %p56_p2 = scmp.eq.s32.totalorder %s1364_s29, 0 }
  0x15   : > { %s1928_s30 = smov (%p37_p0, %s36_s30), 0  ;;  %s1930_s6 = smov (!%p37_p0, %s39_s6), %s1360_s28 }
  0x16   : > { %1888 = sst [smem:[#allocation21_spill]] %s1928_s30  ;;  %s44_s8 = ssub.s32 %s1356_s27, %s1928_s30 }
  0x17   : > { %p1479_p3 = por %p56_p2, %p55_p1  ;;  %p41_p4 = scmp.ge.s32.totalorder %s1930_s6, 2 }
  0x18   : > { %p1877_p5 = scmp.lt.s32.totalorder %s1364_s29, 4  ;;  %s197_s10 = sand.u32 1, %s1364_s29  }
  0x19   : > { %s1932_s6 = smov (%p41_p4, %s1930_s6), 0  ;;  %s199_s11 = sand.u32 1, %s1344_s25  }
  0x1a   : > { %1890 = sst [smem:[#allocation22_spill]] %s1932_s6  ;;  %s1490_s12 = ssub.s32 %s1360_s28, %s1932_s6 }
  0x1b   : > { %s45_s13 = sor.u32 %s44_s8, %s1490_s12  ;;  %p93_p6 = scmp.eq.s32.totalorder %s1490_s12, 0 }
  0x1c   : > { %p46_p7 = scmp.eq.s32.totalorder %s45_s13, 0  ;;  %s885_s14 = sshll.u32 %s199_s11, 6 }
  0x1d   : > { %s918_s15 = sshll.u32 %s1360_s28, 5  ;;  %s201_s18 = scalar_lea.vmem [#allocation5], %s885_s14 }
  0x1e   : > { %s1496_s16 = scalar_select %p46_p7, %s1344_s25, %s48_s7  }
  0x1f   : > { %s207_s17 = sadd.s32 %s1356_s27, %s918_s15  ;;  %s210_s19 = sshll.u32 %s201_s18, 4  ;;  %s211_s19 = int_to_ptr.vmem [resolvable:$true] %s210_s19 }
  0x20   : > { %1891 = sst [smem:[#allocation23_spill]] %s1496_s16  ;;  %s888_s30 = sshll.u32 %s207_s17, 6 }
  0x21   : > { %s1892_s1 = sld [smem:[#allocation24_spill]]  ;;  %p1506_p8 = pnand %p1877_p5, %p1479_p3 }
  0x22   : > { %s1510_s8 = scalar_lea.sflag [#allocation6], %s197_s10  ;;  %s1137_s7 = scalar_lea.vmem %s211_s19, 1024 }
  0x23   : > { %p1126_p9 = pneg %p1506_p8  ;;  %p1138_p10 = scmp.ne.s32.totalorder %s211_s19, %s1137_s7 }
  0x24   : > { %s1366_s11 = smov [#allocation5]  }
  0x25   : > { %p1140_p11 = pnand %p1138_p10, %p1126_p9  ;;  %s1142_s13 = sshll.u32 %s1366_s11, 4  ;;  %s1143_s13 = int_to_ptr.vmem [resolvable:$false] %s1142_s13 }
  0x26   : > { %s1144_s4 = scalar_lea.vmem %s1143_s13, 2048  ;;  %p1145_p13 = scmp.lt.s32.totalorder %s211_s19, %s1143_s13 }
  0x27   : > { %s209_s26 = scalar_lea.hbm %s1892_s1, %s888_s30  ;;  %p1141_p12 = pneg %p1140_p11 }
  0x28   : > { %p1146_p0 = scmp.lt.s32.totalorder %s1144_s4, %s1137_s7 }
  0x2a   : > { %p1147_p1 = por %p1146_p0, %p1145_p13 }
  0x2c   : > { %p1148_p3 = pnand %p1147_p1, %p1141_p12 }
  0x2e   : > { %1151 = shalt.err (!%p1148_p3)
}
  0x2f   : > { %s1882_s5 = smov 128   ;;  %s1368_s30 = smov 64  }
  0x30   : > { %s1369_s9 = smov 4   ;;  %s1519_s10 = sadd.s32 4294967295, %s1364_s29  }
  0x31   : > { %1005 = dma.hbm_to_vmem [thread:$0]  (!%p1506_p8), %s209_s26, 1024, %s211_s19, %s1510_s8, %s1882_s5, %s1368_s30, %s1369_s9  }
  0x32   : > { %s881_s14 = sadd.s32 4294967294, %s1364_s29   ;;  %p61_p4 = scmp.ne.s32.totalorder %s1340_s24, %s1336_s23 }
  0x33   : > { %p1878_p7 = scmp.eq.s32.totalorder %s1519_s10, 0  ;;  %p108_p9 = scmp.ne.s32.totalorder %s1328_s21, %s1324_s20 }
  0x34   : > { %p138_p11 = scmp.eq.s32.totalorder %s881_s14, 3  ;;  %p882_p0 = scmp.ge.s32.totalorder %s1364_s29, 1 }
  0x35   : > { %p1530_p8 = por %p1878_p7, %p61_p4  ;;  %p1536_p12 = por %p108_p9, %p1878_p7 }
  0x36   : > { %p1540_p13 = por %p138_p11, %p108_p9  ;;  %p171_p1 = scmp.lt.s32.totalorder %s1364_s29, 5 }
  0x37   : > { %s1894_s26 = scalar_select %p1530_p8, 1, 0 }
  0x38   : > { %s1895_s23 = scalar_select %p1536_p12, 1, 0 }
  0x39   : > { %s1896_s6 = scalar_select %p1540_p13, 1, 0 }
  0x3a   : > { %p1546_p3 = pnand %p882_p0, %p171_p1  ;;  %s1370_s17 = smov [#allocation8]  }
  0x3b   : > { %s183_s18 = sshll.u32 %s1370_s17, 4  ;;  %s95_s19 = sadd.s32 1, %s1332_s22  ;;  %s184_s18 = int_to_ptr.vmem [resolvable:$true] %s183_s18 }
  0x3c   : > { %p998_p4 = pneg %p1546_p3  ;;  %p102_p5 = scmp.ne.s32.totalorder %s1332_s22, %s1328_s21 }
  0x3d   : > { %s222_s11 = sand.u32 1, %s1332_s22   ;;  %s1163_s30 = scalar_lea.vmem %s184_s18, 4096 }
  0x3e   : > { %p1557_p10 = pnand %p998_p4, %p1878_p7  ;;  %p1572_p9 = por %p102_p5, %p56_p2 }
  0x3f   : > { %s1565_s13 = scalar_select %p93_p6, %s1332_s22, %s95_s19  }
  0x40   : > { %p1154_p11 = pneg %p1557_p10  ;;  %p1164_p0 = scmp.ne.s32.totalorder %s184_s18, %s1163_s30 }
  0x41   : > { %p1171_p7 = scmp.lt.s32.totalorder %s184_s18, %s184_s18  ;;  %p1172_p13 = scmp.lt.s32.totalorder %s1163_s30, %s1163_s30 }
  0x42   : > { %p1166_p1 = pnand %p1164_p0, %p1154_p11 }
  0x43   : > { %p1173_p12 = por %p1172_p13, %p1171_p7 }
  0x44   : > { %p1167_p4 = pneg %p1166_p1 }
  0x46   : > { %p1174_p8 = pnand %p1173_p12, %p1167_p4 }
  0x48   : > { %1177 = shalt.err (!%p1174_p8)
}
  0x49   : > { %s1371_s12 = smov 8   ;;  %p1900_p2 = scmp.eq.s32.totalorder %s1519_s10, 3 }
  0x4a   : > { %1001 = dma.hbm_to_vmem [thread:$0]  (!%p1557_p10), %s1868_s2, 4096, %s184_s18, [#allocation9], %s1882_s5, %s1882_s5, %s1371_s12  }
  0x4b   : > { %p1590_p6 = por %p1900_p2, %p102_p5  ;;  %s889_s19 = sshll.u32 %s222_s11, 7 }
  0x4c   : > { %s919_s7 = sshll.u32 %s1360_s28, 11  ;;  %s224_s9 = scalar_lea.vmem [#allocation10], %s889_s19 }
  0x4d   : > { %s230_s27 = scalar_lea.hbm %s1869_s3, %s919_s7  ;;  %s231_s14 = sshll.u32 %s224_s9, 4  ;;  %s232_s14 = int_to_ptr.vmem [resolvable:$true] %s231_s14 }
  0x4e   : > { %p1902_p7 = scmp.lt.s32.totalorder %s1364_s29, 4  ;;  %s1191_s18 = scalar_lea.vmem %s232_s14, 2048 }
  0x4f   : > { %p1192_p10 = scmp.ne.s32.totalorder %s232_s14, %s1191_s18  ;;  %s1372_s11 = smov [#allocation10]  }
  0x50   : > { %p1602_p8 = pnand %p1902_p7, %p1572_p9  ;;  %s1196_s5 = sshll.u32 %s1372_s11, 4  ;;  %s1197_s5 = int_to_ptr.vmem [resolvable:$false] %s1196_s5 }
  0x51   : > { %s1198_s1 = scalar_lea.vmem %s1197_s5, 4096  ;;  %p1199_p11 = scmp.lt.s32.totalorder %s232_s14, %s1197_s5 }
  0x52   : > { %p1180_p5 = pneg %p1602_p8  ;;  %p1200_p0 = scmp.lt.s32.totalorder %s1198_s1, %s1191_s18 }
  0x54   : > { %p1194_p12 = pnand %p1192_p10, %p1180_p5  ;;  %p1201_p1 = por %p1200_p0, %p1199_p11 }
  0x56   : > { %p1195_p13 = pneg %p1194_p12 }
  0x58   : > { %p1202_p4 = pnand %p1201_p1, %p1195_p13 }
  0x5a   : > { %1205 = shalt.err (!%p1202_p4)
}
  0x5b   : > { %s1904_s4 = smov 128   ;;  %243 = sbr.rel (%p1546_p3) target bundleno = 441 (0x1b9), region = 32 }
  0x5c   : > { %1008 = dma.hbm_to_vmem [thread:$0]  (!%p1602_p8), %s230_s27, 2048, %s232_s14, %s1510_s8, %s1904_s4, %s1904_s4, %s1371_s12  }
  0x5d   : > { %s245_s19 = sand.u32 (!%p1546_p3), 1, %s1519_s10   ;;  %s247_s7 = sand.u32 (!%p1546_p3), 1, %s1340_s24  }
  0x5e   : > { %s893_s30 = sshll.u32 (!%p1546_p3), %s247_s7, 6  ;;  %s246_s5 = scalar_lea.sflag (!%p1546_p3), [#allocation6], %s245_s19 }
  0x5f   : > { %s1617_s9 = scalar_lea.vmem (!%p1546_p3), [#allocation5], %s893_s30  ;;  %p1905_p9 = scmp.ne.s32.totalorder (!%p1546_p3), %s1894_s26, 0 }
  0x61   : > { %1303 = dma.done.wait (%p1905_p9), %s246_s5, 1024  }
  0x62   : > { %1305 = vsyncadd (%p1905_p9), %s246_s5, 4294966272  ;;  %p1906_p2 = scmp.eq.s32.totalorder %s1519_s10, 0 }
  0x64   : > { %1307 = dma.done.wait (%p1906_p2), [#allocation9], 4096   ;;  %p1907_p7 = pmov %p1906_p2 }
  0x65   : > { %s1628_s27 = sand.u32 1, %s1328_s21   ;;  %p1908_p3 = scmp.ne.s32.totalorder %s1895_s23, 0 }
  0x66   : > { %1309 = vsyncadd (%p1907_p7), [#allocation9], 4294963200  ;;  %s895_s16 = sshll.u32 %s1628_s27, 7 }
  0x67   : > { %s1631_s8 = scalar_lea.vmem [#allocation10], %s895_s16 }
  0x68   : > { %1311 = dma.done.wait (%p1908_p3), %s246_s5, 2048  }
  0x69   : > { %1313 = vsyncadd (%p1908_p3), %s246_s5, 4294965248  ;;  %s1637_s26 = scalar_lea.vmem [#allocation11], %s895_s16  ;;  %s1639_s15 = scalar_lea.vmem [#allocation12], %s895_s16 }
  0x6a   : > { %p898_p8 = scmp.ne.s32.totalorder %s1348_s0, 0 }
  0x6c   : > { %305 = sbr.rel (%p898_p8) target bundleno = 122 (0x7a), region = 48 }
  0x71   : > { %v1373_v0 = vmov 0.0  }
  0x72   : > { %306 = vst [vmem:[#allocation2 + $0x30] sm:$0xff] %v1373_v0  ;;  %307 = vst [vmem:[#allocation2] sm:$0xff] %v1373_v0 }
  0x73   : > { %308 = vst [vmem:[#allocation2 + $0x58] sm:$0xff] %v1373_v0  ;;  %309 = vst [vmem:[#allocation2 + $0x18] sm:$0xff] %v1373_v0 }
  0x74   : > { %310 = vst [vmem:[#allocation2 + $0x50] sm:$0xff] %v1373_v0  ;;  %311 = vst [vmem:[#allocation2 + $0x68] sm:$0xff] %v1373_v0 }
  0x75   : > { %312 = vst [vmem:[#allocation2 + $0x8] sm:$0xff] %v1373_v0  ;;  %313 = vst [vmem:[#allocation2 + $0x48] sm:$0xff] %v1373_v0 }
  0x76   : > { %314 = vst [vmem:[#allocation2 + $0x40] sm:$0xff] %v1373_v0  ;;  %315 = vst [vmem:[#allocation2 + $0x20] sm:$0xff] %v1373_v0 }
  0x77   : > { %316 = vst [vmem:[#allocation2 + $0x10] sm:$0xff] %v1373_v0  ;;  %317 = vst [vmem:[#allocation2 + $0x38] sm:$0xff] %v1373_v0 }
  0x78   : > { %318 = vst [vmem:[#allocation2 + $0x60] sm:$0xff] %v1373_v0  ;;  %319 = vst [vmem:[#allocation2 + $0x70] sm:$0xff] %v1373_v0 }
  0x79   : > { %320 = vst [vmem:[#allocation2 + $0x78] sm:$0xff] %v1373_v0  ;;  %321 = vst [vmem:[#allocation2 + $0x28] sm:$0xff] %v1373_v0 }
  0x7a PF: > { %s899_s10 = sshll.u32 %s1348_s0, 7  ;;  %v1116_v1 = vld [vmem:[%s1617_s9] sm:$0xff]   ;;  %v1118_v27 = vld [vmem:[%s1617_s9 + $0x8] sm:$0xff]   ;;  %v1120_v29 = vld [vmem:[%s1617_s9 + $0x10] sm:$0xff]   ;;  %p908_p5 = scmp.ne.s32.totalorder %s1348_s0, 1 }
  0x7b   : > { %v1117_v2 = vld [vmem:[%s1617_s9 + $0x20] sm:$0xff]   ;;  %s1645_s23 = scalar_lea.vmem [#allocation8], %s899_s10  ;;  %954 = vmatprep.mubr.bf16.mxu0 %v1116_v1  ;;  %v1119_v28 = vld [vmem:[%s1617_s9 + $0x28] sm:$0xff]   ;;  %v1121_v30 = vld [vmem:[%s1617_s9 + $0x30] sm:$0xff]   ;;  %s1909_s12 = sld [smem:[#allocation19_spill]] (!%p908_p5) }
  0x7c   : > { %v338_v3 = vld [vmem:[%s1645_s23 + $0x70] sm:$0xff]  ;;  %v339_v4 = vld [vmem:[%s1645_s23 + $0x78] sm:$0xff]  ;;  %v336_v5 = vld [vmem:[%s1645_s23 + $0x60] sm:$0xff]  ;;  %962 = vmatprep.mubr.bf16.mxu1 %v1117_v2  ;;  %s1671_s18 = sld [smem:[#allocation4]] (!%p908_p5) }
  0x7d   : > { %v347_v6 = vpack.c.bf16 %v339_v4, %v338_v3  ;;  %v337_v7 = vld [vmem:[%s1645_s23 + $0x68] sm:$0xff]  ;;  %v334_v9 = vld [vmem:[%s1645_s23 + $0x50] sm:$0xff]  ;;  %v335_v10 = vld [vmem:[%s1645_s23 + $0x58] sm:$0xff] }
  0x7e   : > { %v346_v8 = vpack.c.bf16 %v337_v7, %v336_v5  ;;  %v345_v11 = vpack.c.bf16 %v335_v10, %v334_v9  ;;  %v332_v12 = vld [vmem:[%s1645_s23 + $0x40] sm:$0xff]  ;;  %v333_v13 = vld [vmem:[%s1645_s23 + $0x48] sm:$0xff]  ;;  %v330_v15 = vld [vmem:[%s1645_s23 + $0x30] sm:$0xff] }
  0x7f   : > { %938 = vmatprep.subr.bf16.mxu0 %v347_v6  ;;  %970 = vmatprep.subr.bf16.mxu1 %v347_v6  ;;  %v344_v14 = vpack.c.bf16 %v333_v13, %v332_v12  ;;  %v331_v16 = vld [vmem:[%s1645_s23 + $0x38] sm:$0xff]  ;;  %v328_v18 = vld [vmem:[%s1645_s23 + $0x20] sm:$0xff]  ;;  %v329_v19 = vld [vmem:[%s1645_s23 + $0x28] sm:$0xff] }
  0x80   : > { %939 = vmatpush3.bf16.msra.mxu0 %v347_v6  ;;  %978 = vmatpush3.bf16.msra.mxu1 %v347_v6  ;;  %v343_v17 = vpack.c.bf16 %v331_v16, %v330_v15  ;;  %v342_v20 = vpack.c.bf16 %v329_v19, %v328_v18  ;;  %v326_v21 = vld [vmem:[%s1645_s23 + $0x10] sm:$0xff]  ;;  %v327_v22 = vld [vmem:[%s1645_s23 + $0x18] sm:$0xff]  ;;  %v324_v24 = vld [vmem:[%s1645_s23] sm:$0xff] }
  0x81   : > { %940 = vmatprep.subr.bf16.mxu0 %v346_v8  ;;  %971 = vmatprep.subr.bf16.mxu1 %v346_v8  ;;  %v341_v23 = vpack.c.bf16 %v327_v22, %v326_v21  ;;  %v325_v25 = vld [vmem:[%s1645_s23 + $0x8] sm:$0xff]  ;;  %v1122_v31 = vld [vmem:[%s1617_s9 + $0x18] sm:$0xff]   ;;  %v358_v34 = vld [vmem:[#allocation2 + $0x10] sm:$0xff]  ;;  %s909_s14 = sshll.u32 (!%p908_p5), %s1909_s12, 7 }
  0x82   : > { %v340_v26 = vpack.c.bf16 %v325_v25, %v324_v24  ;;  %v1123_v32 = vld [vmem:[%s1617_s9 + $0x38] sm:$0xff]   ;;  %v348_v37 = vld [vmem:[#allocation2 + $0x30] sm:$0xff]  ;;  %v356_v38 = vld [vmem:[#allocation2 + $0x40] sm:$0xff]  ;;  %s1673_s11 = scalar_lea.vmem (!%p908_p5), [#allocation8], %s909_s14 }
  0x83   : > { %v350_v33 = vld [vmem:[#allocation2 + $0x58] sm:$0xff]  ;;  %v349_v49 = vld [vmem:[#allocation2] sm:$0xff]  ;;  %v354_v55 = vld [vmem:[#allocation2 + $0x8] sm:$0xff] }
  0x84   : > { %941 = vmatpush3.bf16.msra.mxu0 %v346_v8  ;;  %979 = vmatpush3.bf16.msra.mxu1 %v346_v8  ;;  %v351_v43 = vld [vmem:[#allocation2 + $0x18] sm:$0xff]  ;;  %v357_v50 = vld [vmem:[#allocation2 + $0x20] sm:$0xff]  ;;  %v352_v61 = vld [vmem:[#allocation2 + $0x50] sm:$0xff] }
  0x85   : > { %942 = vmatprep.subr.bf16.mxu0 %v345_v11  ;;  %972 = vmatprep.subr.bf16.mxu1 %v345_v11  ;;  %v359_v44 = vld [vmem:[#allocation2 + $0x38] sm:$0xff]  ;;  %v360_v62 = vld [vmem:[#allocation2 + $0x60] sm:$0xff]  ;;  %v355_v3 = vld [vmem:[#allocation2 + $0x48] sm:$0xff] }
  0x86   : > { %v362_v56 = vld [vmem:[#allocation2 + $0x78] sm:$0xff]  ;;  %v363_v4 = vld [vmem:[#allocation2 + $0x28] sm:$0xff]  ;;  %v361_v10 = vld [vmem:[#allocation2 + $0x70] sm:$0xff] }
  0x87   : > { %v353_v9 = vld [vmem:[#allocation2 + $0x68] sm:$0xff] }
  0x88   : > { %943 = vmatpush3.bf16.msra.mxu0 %v345_v11  ;;  %980 = vmatpush3.bf16.msra.mxu1 %v345_v11 }
  0x89   : > { %944 = vmatprep.subr.bf16.mxu0 %v344_v14  ;;  %973 = vmatprep.subr.bf16.mxu1 %v344_v14 }
  0x8c   : > { %945 = vmatpush3.bf16.msra.mxu0 %v344_v14  ;;  %981 = vmatpush3.bf16.msra.mxu1 %v344_v14 }
  0x8d   : > { %946 = vmatprep.subr.bf16.mxu0 %v343_v17  ;;  %974 = vmatprep.subr.bf16.mxu1 %v343_v17 }
  0x90   : > { %947 = vmatpush3.bf16.msra.mxu0 %v343_v17  ;;  %982 = vmatpush3.bf16.msra.mxu1 %v343_v17 }
  0x91   : > { %948 = vmatprep.subr.bf16.mxu0 %v342_v20  ;;  %975 = vmatprep.subr.bf16.mxu1 %v342_v20 }
  0x94   : > { %949 = vmatpush3.bf16.msra.mxu0 %v342_v20  ;;  %983 = vmatpush3.bf16.msra.mxu1 %v342_v20 }
  0x95   : > { %950 = vmatprep.subr.bf16.mxu0 %v341_v23  ;;  %976 = vmatprep.subr.bf16.mxu1 %v341_v23 }
  0x98   : > { %951 = vmatpush3.bf16.msra.mxu0 %v341_v23  ;;  %984 = vmatpush3.bf16.msra.mxu1 %v341_v23 }
  0x99   : > { %952 = vmatprep.subr.bf16.mxu0 %v340_v26  ;;  %977 = vmatprep.subr.bf16.mxu1 %v340_v26 }
  0x9c   : > { %953 = vmatpush3.bf16.msra.mxu0 %v340_v26  ;;  %985 = vmatpush3.bf16.msra.mxu1 %v340_v26 }
  0x9f   : > { %955 = vmatmul.mubr.bf16.vlgmr.msra.gmra.mxu0 %v1118_v27  ;;  %963 = vmatmul.mubr.bf16.vlgmr.msra.gmra.mxu1 %v1119_v28 }
  0xa0   : > { %958 = vmatprep.mubr.bf16.mxu0 %v1120_v29  ;;  %966 = vmatprep.mubr.bf16.mxu1 %v1121_v30 }
  0xa7   : > { %959 = vmatmul.mubr.bf16.gmra.mxu0 %v1122_v31  ;;  %967 = vmatmul.mubr.bf16.gmra.mxu1 %v1123_v32 }
 0x15f   : > { %v956_v35 = vpop.f32.mrf.mxu0  ;;  %v964_v36 = vpop.f32.mrf.mxu1 }
 0x160   : > { %v527_v39 = vadd.f32 %v956_v35, %v350_v33  ;;  %v535_v40 = vadd.f32 %v964_v36, %v358_v34 }
 0x161   : > { %v462_v41 = vpop.f32.mrf.mxu0  ;;  %v494_v42 = vpop.f32.mrf.mxu1 }
 0x162   : > { %543 = vst [vmem:[#allocation2 + $0x58] sm:$0xff] %v527_v39  ;;  %551 = vst [vmem:[#allocation2 + $0x10] sm:$0xff] %v535_v40  ;;  %v525_v45 = vadd.f32 %v462_v41, %v348_v37  ;;  %v533_v46 = vadd.f32 %v494_v42, %v356_v38 }
 0x163   : > { %v957_v47 = vpop.f32.mrf.mxu0  ;;  %v965_v48 = vpop.f32.mrf.mxu1 }
 0x164   : > { %541 = vst [vmem:[#allocation2 + $0x30] sm:$0xff] %v525_v45  ;;  %549 = vst [vmem:[#allocation2 + $0x40] sm:$0xff] %v533_v46  ;;  %v528_v51 = vadd.f32 %v957_v47, %v351_v43  ;;  %v536_v52 = vadd.f32 %v965_v48, %v359_v44 }
 0x165   : > { %v465_v53 = vpop.f32.mrf.mxu0  ;;  %v497_v54 = vpop.f32.mrf.mxu1 }
 0x166   : > { %544 = vst [vmem:[#allocation2 + $0x18] sm:$0xff] %v528_v51  ;;  %552 = vst [vmem:[#allocation2 + $0x38] sm:$0xff] %v536_v52  ;;  %v526_v57 = vadd.f32 %v465_v53, %v349_v49  ;;  %v534_v58 = vadd.f32 %v497_v54, %v357_v50 }
 0x167   : > { %v960_v59 = vpop.f32.mrf.mxu0  ;;  %v968_v60 = vpop.f32.mrf.mxu1 }
 0x168   : > { %542 = vst [vmem:[#allocation2] sm:$0xff] %v526_v57  ;;  %550 = vst [vmem:[#allocation2 + $0x20] sm:$0xff] %v534_v58  ;;  %v531_v63 = vadd.f32 %v960_v59, %v354_v55  ;;  %v539_v0 = vadd.f32 %v968_v60, %v362_v56 }
 0x169   : > { %v478_v1 = vpop.f32.mrf.mxu0  ;;  %v510_v2 = vpop.f32.mrf.mxu1 }
 0x16a   : > { %547 = vst [vmem:[#allocation2 + $0x8] sm:$0xff] %v531_v63  ;;  %555 = vst [vmem:[#allocation2 + $0x78] sm:$0xff] %v539_v0  ;;  %v529_v5 = vadd.f32 %v478_v1, %v352_v61  ;;  %v537_v6 = vadd.f32 %v510_v2, %v360_v62 }
 0x16b   : > { %v961_v7 = vpop.f32.mrf.mxu0  ;;  %v969_v8 = vpop.f32.mrf.mxu1 }
 0x16c   : > { %545 = vst [vmem:[#allocation2 + $0x50] sm:$0xff] %v529_v5  ;;  %553 = vst [vmem:[#allocation2 + $0x60] sm:$0xff] %v537_v6  ;;  %v532_v11 = vadd.f32 %v961_v7, %v355_v3  ;;  %v540_v12 = vadd.f32 %v969_v8, %v363_v4  ;;  %560 = sbr.rel (%p908_p5) target bundleno = 393 (0x189), region = 52 }
 0x16d   : > { %v481_v13 = vpop.f32.mrf.mxu0  ;;  %v513_v14 = vpop.f32.mrf.mxu1 }
 0x16e   : > { %548 = vst [vmem:[#allocation2 + $0x48] sm:$0xff] %v532_v11  ;;  %556 = vst [vmem:[#allocation2 + $0x28] sm:$0xff] %v540_v12  ;;  %v530_v15 = vadd.f32 %v481_v13, %v353_v9  ;;  %v538_v16 = vadd.f32 %v513_v14, %v361_v10 }
 0x170   : > { %546 = vst [vmem:[#allocation2 + $0x68] sm:$0xff] %v530_v15  ;;  %554 = vst [vmem:[#allocation2 + $0x70] sm:$0xff] %v538_v16 }
 0x171   : > { %v579_v17 = vld [vmem:[#allocation2 + $0x30] sm:$0xff]  ;;  %v580_v18 = vld [vmem:[#allocation2] sm:$0xff]  ;;  %v581_v19 = vld [vmem:[#allocation2 + $0x58] sm:$0xff]  ;;  %v1693_v47 = vstv %s1671_s18 }
 0x172   : > { %v582_v20 = vld [vmem:[#allocation2 + $0x18] sm:$0xff]  ;;  %v563_v23 = vld [vmem:[%s1673_s11] sm:$0xff]  ;;  %v564_v24 = vld [vmem:[%s1673_s11 + $0x8] sm:$0xff] }
 0x173   : > { %v583_v21 = vld [vmem:[#allocation2 + $0x50] sm:$0xff]  ;;  %v595_v26 = vsub.f32 %v563_v23, %v579_v17  ;;  %v596_v27 = vsub.f32 %v564_v24, %v580_v18  ;;  %v566_v29 = vld [vmem:[%s1673_s11 + $0x18] sm:$0xff]  ;;  %v567_v30 = vld [vmem:[%s1673_s11 + $0x20] sm:$0xff] }
 0x174   : > { %v565_v25 = vld [vmem:[%s1673_s11 + $0x10] sm:$0xff]  ;;  %v568_v31 = vld [vmem:[%s1673_s11 + $0x28] sm:$0xff]  ;;  %v598_v32 = vsub.f32 %v566_v29, %v582_v20  ;;  %v599_v33 = vsub.f32 %v567_v30, %v583_v21  ;;  %v570_v37 = vld [vmem:[%s1673_s11 + $0x38] sm:$0xff] }
 0x175   : > { %v597_v28 = vsub.f32 %v565_v25, %v581_v19  ;;  %v569_v35 = vld [vmem:[%s1673_s11 + $0x30] sm:$0xff]  ;;  %v585_v36 = vld [vmem:[#allocation2 + $0x8] sm:$0xff]  ;;  %611 = vst [vmem:[%s1637_s26] sm:$0xff] %v595_v26  ;;  %612 = vst [vmem:[%s1637_s26 + $0x8] sm:$0xff] %v596_v27  ;;  %v645_v52 = vmul.f32 %v1693_v47, %v595_v26  ;;  %v646_v53 = vmul.f32 %v1693_v47, %v596_v27 }
 0x176   : > { %v601_v38 = vsub.f32 %v569_v35, %v585_v36  ;;  %v586_v39 = vld [vmem:[#allocation2 + $0x48] sm:$0xff]  ;;  %v571_v40 = vld [vmem:[%s1673_s11 + $0x40] sm:$0xff]  ;;  %614 = vst [vmem:[%s1637_s26 + $0x18] sm:$0xff] %v598_v32  ;;  %615 = vst [vmem:[%s1637_s26 + $0x20] sm:$0xff] %v599_v33  ;;  %v648_v60 = vmul.f32 %v1693_v47, %v598_v32  ;;  %v649_v61 = vmul.f32 %v1693_v47, %v599_v33 }
 0x177   : > { %v584_v22 = vld [vmem:[#allocation2 + $0x68] sm:$0xff]  ;;  %613 = vst [vmem:[%s1637_s26 + $0x10] sm:$0xff] %v597_v28  ;;  %v587_v41 = vld [vmem:[#allocation2 + $0x40] sm:$0xff]  ;;  %v602_v42 = vsub.f32 %v570_v37, %v586_v39  ;;  %v573_v46 = vld [vmem:[%s1673_s11 + $0x50] sm:$0xff]  ;;  %v647_v54 = vmul.f32 %v1693_v47, %v597_v28 }
 0x178   : > { %v600_v34 = vsub.f32 %v568_v31, %v584_v22  ;;  %v603_v43 = vsub.f32 %v571_v40, %v587_v41  ;;  %v572_v44 = vld [vmem:[%s1673_s11 + $0x48] sm:$0xff]  ;;  %v588_v45 = vld [vmem:[#allocation2 + $0x20] sm:$0xff]  ;;  %617 = vst [vmem:[%s1637_s26 + $0x30] sm:$0xff] %v601_v38  ;;  %v589_v49 = vld [vmem:[#allocation2 + $0x10] sm:$0xff]  ;;  %v651_v3 = vmul.f32 %v1693_v47, %v601_v38 }
 0x179   : > { %v604_v48 = vsub.f32 %v572_v44, %v588_v45  ;;  %v574_v50 = vld [vmem:[%s1673_s11 + $0x58] sm:$0xff]  ;;  %618 = vst [vmem:[%s1637_s26 + $0x38] sm:$0xff] %v602_v42  ;;  %v605_v55 = vsub.f32 %v573_v46, %v589_v49  ;;  %v575_v57 = vld [vmem:[%s1673_s11 + $0x60] sm:$0xff]  ;;  %v576_v59 = vld [vmem:[%s1673_s11 + $0x68] sm:$0xff]  ;;  %v652_v4 = vmul.f32 %v1693_v47, %v602_v42 }
 0x17a   : > { %616 = vst [vmem:[%s1637_s26 + $0x28] sm:$0xff] %v600_v34  ;;  %v590_v51 = vld [vmem:[#allocation2 + $0x38] sm:$0xff]  ;;  %619 = vst [vmem:[%s1637_s26 + $0x40] sm:$0xff] %v603_v43  ;;  %v591_v58 = vld [vmem:[#allocation2 + $0x60] sm:$0xff]  ;;  %v650_v2 = vmul.f32 %v1693_v47, %v600_v34  ;;  %v653_v10 = vmul.f32 %v1693_v47, %v603_v43 }
 0x17b   : > { %v606_v56 = vsub.f32 %v574_v50, %v590_v51  ;;  %620 = vst [vmem:[%s1637_s26 + $0x48] sm:$0xff] %v604_v48  ;;  %v607_v62 = vsub.f32 %v575_v57, %v591_v58  ;;  %v592_v63 = vld [vmem:[#allocation2 + $0x70] sm:$0xff]  ;;  %v593_v1 = vld [vmem:[#allocation2 + $0x78] sm:$0xff]  ;;  %621 = vst [vmem:[%s1637_s26 + $0x50] sm:$0xff] %v605_v55  ;;  %v654_v11 = vmul.f32 %v1693_v47, %v604_v48 }
 0x17c   : > { %v577_v0 = vld [vmem:[%s1673_s11 + $0x70] sm:$0xff]  ;;  %v608_v5 = vsub.f32 %v576_v59, %v592_v63  ;;  %v578_v7 = vld [vmem:[%s1673_s11 + $0x78] sm:$0xff]  ;;  %v594_v8 = vld [vmem:[#allocation2 + $0x28] sm:$0xff]  ;;  %v655_v17 = vmul.f32 %v1693_v47, %v605_v55 }
 0x17d   : > { %622 = vst [vmem:[%s1637_s26 + $0x58] sm:$0xff] %v606_v56  ;;  %v609_v6 = vsub.f32 %v577_v0, %v593_v1  ;;  %v627_v9 = vld [vmem:[%s1631_s8] sm:$0xff]  ;;  %623 = vst [vmem:[%s1637_s26 + $0x60] sm:$0xff] %v607_v62  ;;  %v610_v12 = vsub.f32 %v578_v7, %v594_v8  ;;  %v628_v14 = vld [vmem:[%s1631_s8 + $0x8] sm:$0xff]  ;;  %v656_v18 = vmul.f32 %v1693_v47, %v606_v56 }
 0x17e   : > { %v661_v13 = vadd.f32 %v645_v52, %v627_v9  ;;  %v629_v15 = vld [vmem:[%s1631_s8 + $0x10] sm:$0xff]  ;;  %v630_v16 = vld [vmem:[%s1631_s8 + $0x18] sm:$0xff]  ;;  %624 = vst [vmem:[%s1637_s26 + $0x68] sm:$0xff] %v608_v5  ;;  %v662_v19 = vadd.f32 %v646_v53, %v628_v14  ;;  %v631_v22 = vld [vmem:[%s1631_s8 + $0x20] sm:$0xff]  ;;  %v657_v25 = vmul.f32 %v1693_v47, %v607_v62  ;;  %v658_v32 = vmul.f32 %v1693_v47, %v608_v5 }
 0x17f   : > { %625 = vst [vmem:[%s1637_s26 + $0x70] sm:$0xff] %v609_v6  ;;  %v663_v20 = vadd.f32 %v647_v54, %v629_v15  ;;  %v664_v21 = vadd.f32 %v648_v60, %v630_v16  ;;  %v632_v23 = vld [vmem:[%s1631_s8 + $0x28] sm:$0xff]  ;;  %v633_v24 = vld [vmem:[%s1631_s8 + $0x30] sm:$0xff]  ;;  %626 = vst [vmem:[%s1637_s26 + $0x78] sm:$0xff] %v610_v12  ;;  %v665_v26 = vadd.f32 %v649_v61, %v631_v22 }
 0x180   : > { %677 = vst [vmem:[%s1639_s15] sm:$0xff] %v661_v13  ;;  %v666_v27 = vadd.f32 %v650_v2, %v632_v23  ;;  %v667_v28 = vadd.f32 %v651_v3, %v633_v24  ;;  %v634_v29 = vld [vmem:[%s1631_s8 + $0x38] sm:$0xff]  ;;  %v635_v30 = vld [vmem:[%s1631_s8 + $0x40] sm:$0xff]  ;;  %v636_v31 = vld [vmem:[%s1631_s8 + $0x48] sm:$0xff]  ;;  %v659_v39 = vmul.f32 %v1693_v47, %v609_v6  ;;  %v660_v46 = vmul.f32 %v1693_v47, %v610_v12 }
 0x181   : > { %678 = vst [vmem:[%s1639_s15 + $0x8] sm:$0xff] %v662_v19  ;;  %679 = vst [vmem:[%s1639_s15 + $0x10] sm:$0xff] %v663_v20  ;;  %v668_v33 = vadd.f32 %v652_v4, %v634_v29  ;;  %v669_v34 = vadd.f32 %v653_v10, %v635_v30  ;;  %v670_v35 = vadd.f32 %v654_v11, %v636_v31  ;;  %v637_v36 = vld [vmem:[%s1631_s8 + $0x50] sm:$0xff]  ;;  %v638_v37 = vld [vmem:[%s1631_s8 + $0x58] sm:$0xff] }
 0x182   : > { %680 = vst [vmem:[%s1639_s15 + $0x18] sm:$0xff] %v664_v21  ;;  %v639_v38 = vld [vmem:[%s1631_s8 + $0x60] sm:$0xff]  ;;  %681 = vst [vmem:[%s1639_s15 + $0x20] sm:$0xff] %v665_v26  ;;  %v671_v40 = vadd.f32 %v655_v17, %v637_v36  ;;  %v672_v41 = vadd.f32 %v656_v18, %v638_v37  ;;  %v640_v43 = vld [vmem:[%s1631_s8 + $0x68] sm:$0xff] }
 0x183   : > { %682 = vst [vmem:[%s1639_s15 + $0x28] sm:$0xff] %v666_v27  ;;  %683 = vst [vmem:[%s1639_s15 + $0x30] sm:$0xff] %v667_v28  ;;  %v673_v42 = vadd.f32 %v657_v25, %v639_v38  ;;  %v641_v44 = vld [vmem:[%s1631_s8 + $0x70] sm:$0xff]  ;;  %v642_v45 = vld [vmem:[%s1631_s8 + $0x78] sm:$0xff]  ;;  %v674_v48 = vadd.f32 %v658_v32, %v640_v43 }
 0x184   : > { %684 = vst [vmem:[%s1639_s15 + $0x38] sm:$0xff] %v668_v33  ;;  %685 = vst [vmem:[%s1639_s15 + $0x40] sm:$0xff] %v669_v34  ;;  %v675_v49 = vadd.f32 %v659_v39, %v641_v44  ;;  %v676_v50 = vadd.f32 %v660_v46, %v642_v45 }
 0x185   : > { %686 = vst [vmem:[%s1639_s15 + $0x48] sm:$0xff] %v670_v35  ;;  %687 = vst [vmem:[%s1639_s15 + $0x50] sm:$0xff] %v671_v40 }
 0x186   : > { %688 = vst [vmem:[%s1639_s15 + $0x58] sm:$0xff] %v672_v41  ;;  %689 = vst [vmem:[%s1639_s15 + $0x60] sm:$0xff] %v673_v42 }
 0x187   : > { %690 = vst [vmem:[%s1639_s15 + $0x68] sm:$0xff] %v674_v48  ;;  %691 = vst [vmem:[%s1639_s15 + $0x70] sm:$0xff] %v675_v49 }
 0x188   : > { %692 = vst [vmem:[%s1639_s15 + $0x78] sm:$0xff] %v676_v50 }
 0x189 PF: > { %s1910_s0 = sld [smem:[#allocation19_spill]]  ;;  %s712_s5 = sshll.u32 %s1637_s26, 4  ;;  %s1767_s5 = int_to_ptr.vmem [resolvable:$true] %s712_s5 }
 0x18a   : > { %s1911_s7 = sld [smem:[#allocation25_spill]]  ;;  %s694_s9 = scalar_lea.sflag [#allocation7], %s1628_s27 }
 0x18b   : > { %s1206_s16 = scalar_lea.vmem %s1767_s5, 2048  ;;  %s1374_s8 = smov [#allocation11]  }
 0x18c   : > { %p1207_p10 = scmp.ne.s32.totalorder %s1767_s5, %s1206_s16  ;;  %s1210_s10 = sshll.u32 %s1374_s8, 4  ;;  %s1211_s10 = int_to_ptr.vmem [resolvable:$false] %s1210_s10 }
 0x18d   : > { %s1212_s23 = scalar_lea.vmem %s1211_s10, 4096  ;;  %p1213_p11 = scmp.lt.s32.totalorder %s1767_s5, %s1211_s10 }
 0x18e   : > { %p1208_p12 = pnand %p1207_p10, %p1590_p6  ;;  %p1214_p0 = scmp.lt.s32.totalorder %s1212_s23, %s1206_s16 }
 0x18f   : > { %s920_s1 = sshll.u32 %s1910_s0, 11 }
 0x190   : > { %s1764_s30 = scalar_lea.hbm %s1911_s7, %s920_s1  ;;  %p1209_p13 = pneg %p1208_p12 }
 0x191   : > { %p1215_p1 = por %p1214_p0, %p1213_p11 }
 0x193   : > { %p1216_p4 = pnand %p1215_p1, %p1209_p13 }
 0x195   : > { %1219 = shalt.err (!%p1216_p4)
}
 0x196   : > { %s1220_s26 = scalar_lea.hbm %s1764_s30, 2048  ;;  %s1224_s18 = scalar_lea.hbm %s1911_s7, 4096 }
 0x197   : > { %p1221_p9 = scmp.ne.s32.totalorder %s1764_s30, %s1220_s26  ;;  %p1225_p3 = scmp.lt.s32.totalorder %s1764_s30, %s1911_s7 }
 0x198   : > { %p1226_p8 = scmp.lt.s32.totalorder %s1224_s18, %s1220_s26 }
 0x199   : > { %p1222_p2 = pnand %p1221_p9, %p1590_p6 }
 0x19a   : > { %p1227_p5 = por %p1226_p8, %p1225_p3 }
 0x19b   : > { %p1223_p7 = pneg %p1222_p2 }
 0x19d   : > { %p1228_p10 = pnand %p1227_p5, %p1223_p7 }
 0x19f   : > { %1231 = shalt.err (!%p1228_p10)
}
 0x1a0   : > { %s1375_s19 = smov 128   ;;  %s1376_s16 = smov 8  }
 0x1a1   : > { %994 = dma.vmem_to_hbm [thread:$0]  (%p1590_p6), %s1767_s5, 2048, %s1764_s30, %s694_s9, %s1375_s19, %s1375_s19, %s1376_s16  }
 0x1a2   : > { %s1912_s23 = sld [smem:[#allocation26_spill]]  ;;  %s728_s14 = sshll.u32 %s1639_s15, 4  ;;  %s1803_s14 = int_to_ptr.vmem [resolvable:$true] %s728_s14 }
 0x1a3   : > { %s699_s18 = scalar_lea.sflag [#allocation13], %s1628_s27  ;;  %s1232_s11 = scalar_lea.vmem %s1803_s14, 2048 }
 0x1a4   : > { %p1233_p12 = scmp.ne.s32.totalorder %s1803_s14, %s1232_s11  ;;  %s1377_s4 = smov [#allocation12]  }
 0x1a5   : > { %s1236_s30 = sshll.u32 %s1377_s4, 4  ;;  %s1237_s30 = int_to_ptr.vmem [resolvable:$false] %s1236_s30 }
 0x1a6   : > { %p1234_p13 = pnand %p1233_p12, %p1590_p6  ;;  %s1238_s0 = scalar_lea.vmem %s1237_s30, 4096 }
 0x1a7   : > { %p1239_p0 = scmp.lt.s32.totalorder %s1803_s14, %s1237_s30  ;;  %p1240_p1 = scmp.lt.s32.totalorder %s1238_s0, %s1232_s11 }
 0x1a8   : > { %s1913_s12 = smov %s1912_s23  ;;  %s1800_s26 = scalar_lea.hbm %s1912_s23, %s920_s1 }
 0x1a9   : > { %p1235_p11 = pneg %p1234_p13  ;;  %p1241_p4 = por %p1240_p1, %p1239_p0 }
 0x1ab   : > { %p1242_p9 = pnand %p1241_p4, %p1235_p11 }
 0x1ad   : > { %1245 = shalt.err (!%p1242_p9)
}
 0x1ae   : > { %s1246_s15 = scalar_lea.hbm %s1800_s26, 2048  ;;  %s1250_s5 = scalar_lea.hbm %s1913_s12, 4096 }
 0x1af   : > { %p1247_p2 = scmp.ne.s32.totalorder %s1800_s26, %s1246_s15  ;;  %p1251_p8 = scmp.lt.s32.totalorder %s1800_s26, %s1913_s12 }
 0x1b0   : > { %p1252_p5 = scmp.lt.s32.totalorder %s1250_s5, %s1246_s15 }
 0x1b1   : > { %p1248_p7 = pnand %p1247_p2, %p1590_p6 }
 0x1b2   : > { %p1253_p10 = por %p1252_p5, %p1251_p8 }
 0x1b3   : > { %p1249_p3 = pneg %p1248_p7 }
 0x1b5   : > { %p1254_p12 = pnand %p1253_p10, %p1249_p3 }
 0x1b7   : > { %1257 = shalt.err (!%p1254_p12)
}
 0x1b8   : > { %995 = dma.vmem_to_hbm [thread:$0]  (%p1590_p6), %s1803_s14, 2048, %s1800_s26, %s699_s18, %s1375_s19, %s1375_s19, %s1376_s16  }
 0x1b9 PF: > { %p1019_p13 = scmp.ge.s32.totalorder %s1364_s29, 2  ;;  %s743_s10 = sand.u32 1, %s1324_s20  }
 0x1ba   : > { %p1914_p11 = scmp.ne.s32.totalorder %s1896_s6, 0  ;;  %s744_s23 = scalar_lea.sflag [#allocation7], %s743_s10 }
 0x1bc   : > { %p1010_p0 = pnand %p1019_p13, %p1914_p11 }
 0x1be   : > { %p1011_p1 = pneg %p1010_p0 }
 0x1c0   : > { %1315 = dma.done.wait (%p1011_p1), %s744_s23, 2048  }
 0x1c1   : > { %1317 = vsyncadd (%p1011_p1), %s744_s23, 4294965248  ;;  %s753_s11 = scalar_lea.sflag [#allocation13], %s743_s10 }
 0x1c2   : > { %1319 = dma.done.wait (%p1011_p1), %s753_s11, 2048  }
 0x1c3   : > { %1321 = vsyncadd (%p1011_p1), %s753_s11, 4294965248  ;;  %s27_s29 = sadd.s32 1, %s1364_s29   ;;  %s1915_s17 = sld [smem:[#allocation23_spill]] }
 0x1c4   : > { %p24_p4 = scmp.ge.s32.totalorder %s27_s29, 6   ;;  %s1916_s0 = sld [smem:[#allocation20_spill]] }
 0x1c5   : > { %s1917_s27 = sld [smem:[#allocation21_spill]]  ;;  %s1919_s20 = smov %s1328_s21 }
 0x1c6   : > { %s1918_s6 = sld [smem:[#allocation22_spill]]  ;;  %s1920_s21 = smov %s1332_s22 }
 0x1c7   : > { %s1921_s22 = smov %s1565_s13  ;;  %s1922_s23 = smov %s1340_s24 }
 0x1c8   : > { %s1923_s24 = smov %s1344_s25  ;;  %s1925_s26 = smov %s1360_s28 }
 0x1c9   : > { %s1924_s25 = smov %s1915_s17  ;;  %26 = sbr.rel (!%p24_p4) target bundleno = 17 (0x11), region = 119 }
 0x1cc   : > { %s1926_s28 = smov %s1918_s6 }
 0x1ce   :  { %758 = vsyncpa [#allocation6], 1 }
 0x1cf   :  { %760 = vsyncpa [#allocation6 + $0x1], 1 }
 0x1d0   :  { %761 = vsyncpa [#allocation9], 1 }
 0x1d1   :  { %762 = vsyncpa [#allocation7], 1 }
 0x1d2   :  { %764 = vsyncpa [#allocation7 + $0x1], 1 }
 0x1d3   :  { %765 = vsyncpa [#allocation13], 1 }
 0x1d4   :  { %767 = vsyncpa [#allocation13 + $0x1], 1 }

</bundles_post_ra>
